<compile_context>
chip_gen: v5e
topology: v5e:2x2
jax: 0.10.0
libtpu: 0.0.40
codegen_flags: <defaults>
</compile_context>

<pallas_src>
import functools

import jax
import jax.numpy as jnp
from jax.experimental import pallas as pl
from jax.experimental.pallas import tpu as pltpu


def _round_up(x: int, m: int) -> int:
    return ((x + m - 1) // m) * m


def _sublane_unit(dtype) -> int:
    # f32 -> 8 rows, bf16 -> 16, int8/fp8 -> 32 (packed sublanes).
    return max(8, 32 // jnp.dtype(dtype).itemsize)


_HW_CONFIG = None


def _hw_config():
    """(vmem_limit_bytes, vmem_budget_bytes, tm_cap, tn_cap, tk_cap), cached."""
    global _HW_CONFIG
    if _HW_CONFIG is None:
        try:
            vmem_phys = int(getattr(pltpu.get_tpu_info(), "vmem_capacity_bytes", 0))
        except Exception:
            vmem_phys = 0
        if vmem_phys >= 100 * 2**20:
            # v5e / v6e: 128 MiB physical VMEM -> large tiles, generous limit.
            _HW_CONFIG = (96 * 2**20, 80 * 2**20, 512, 2048, 2048)
        else:
            # v7x (64 MiB physical) or unknown hardware: stay conservative.
            _HW_CONFIG = (48 * 2**20, 40 * 2**20, 256, 1024, 2048)
    return _HW_CONFIG


def _select_kn_tiles(K: int, N: int, itemsize: int, out_is_f32: bool):
    """Pick (tk, tn) multiples of 128: full K preferred, then widest N that fits."""
    _, budget, tm_cap, tn_cap, tk_cap = _hw_config()
    k_min = _round_up(K, 128)
    n_min = _round_up(N, 128)

    def fits(tk, tn):
        needs_scratch = (tk < K) and not out_is_f32
        buf = 2 * (tm_cap * tk + tk * tn) * itemsize   # double-buffered x / w tiles
        buf += 2 * tm_cap * tn * itemsize              # double-buffered out tile
        if needs_scratch:
            buf += tm_cap * tn * 4                     # f32 accumulator scratch
        return buf <= budget

    tk = min(k_min, tk_cap)
    while tk > 128 and not fits(tk, 128):
        tk -= 128
    tn = min(n_min, tn_cap)
    while tn > 128 and not fits(tk, tn):
        tn -= 128
    return int(tk), int(tn)


# --------------------------- kernels ---------------------------------------

def _mm_kernel_single_k(x_ref, w_ref, o_ref):
    # kt == 1: whole K contraction in one MXU pass; no accumulator round trip.
    o_ref[...] = jnp.dot(
        x_ref[...], w_ref[...], preferred_element_type=jnp.float32
    ).astype(o_ref.dtype)


def _mm_kernel_acc_inplace(x_ref, w_ref, o_ref):
    # kt > 1, f32 output: accumulate straight into the resident output block.
    @pl.when(pl.program_id(2) == 0)
    def _():
        o_ref[...] = jnp.zeros_like(o_ref)

    o_ref[...] += jnp.dot(x_ref[...], w_ref[...], preferred_element_type=jnp.float32)


def _mm_kernel_acc_scratch(x_ref, w_ref, o_ref, acc_ref):
    # kt > 1, narrow output dtype: f32 scratch accumulator, cast on last k step.
    @pl.when(pl.program_id(2) == 0)
    def _():
        acc_ref[...] = jnp.zeros_like(acc_ref)

    acc_ref[...] += jnp.dot(x_ref[...], w_ref[...], preferred_element_type=jnp.float32)

    @pl.when(pl.program_id(2) == pl.num_programs(2) - 1)
    def _():
        o_ref[...] = acc_ref[...].astype(o_ref.dtype)


# --------------------------- per-call wrapper --------------------------------

@functools.partial(jax.jit, static_argnames=("n_out", "tk", "tn"))
def _parallel_linear_call(x, w_kn, *, n_out, tk, tn):
    """y = x @ w_kn (w_kn pre-transposed/padded [K_p, N_p]); returns [M, n_out]."""
    M, K = x.shape
    K_p, N_p = w_kn.shape

    vmem_limit, _, tm_cap, _, _ = _hw_config()

    sub = _sublane_unit(x.dtype)
    tm = min(_round_up(M, sub), tm_cap)
    M_p = _round_up(M, tm)

    if M_p != M or K_p != K:
        x = jnp.pad(x, ((0, M_p - M), (0, K_p - K)))  # zero-padding K is exact

    mt, nt, kt = M_p // tm, N_p // tn, K_p // tk
    out_dtype = x.dtype

    if kt == 1:
        kernel, scratch = _mm_kernel_single_k, []
    elif jnp.dtype(out_dtype) == jnp.dtype(jnp.float32):
        kernel, scratch = _mm_kernel_acc_inplace, []
    else:
        kernel, scratch = _mm_kernel_acc_scratch, [pltpu.VMEM((tm, tn), jnp.float32)]

    itemsize = jnp.dtype(x.dtype).itemsize
    cost = pl.CostEstimate(
        flops=2 * M_p * N_p * K_p,
        transcendentals=0,
        # Include re-read factors: x is read once per N block, w once per M block.
        bytes_accessed=itemsize * (M_p * K_p * nt + K_p * N_p * mt + M_p * N_p),
    )

    out = pl.pallas_call(
        kernel,
        out_shape=jax.ShapeDtypeStruct((M_p, N_p), out_dtype),
        grid_spec=pltpu.PrefetchScalarGridSpec(
            num_scalar_prefetch=0,
            grid=(mt, nt, kt),
            in_specs=[
                pl.BlockSpec((tm, tk), lambda i, j, k: (i, k)),   # x      [M_p, K_p]
                pl.BlockSpec((tk, tn), lambda i, j, k: (k, j)),   # weight [K_p, N_p]
            ],
            out_specs=pl.BlockSpec((tm, tn), lambda i, j, k: (i, j)),
            scratch_shapes=scratch,
        ),
        compiler_params=pltpu.CompilerParams(
            dimension_semantics=("parallel", "parallel", "arbitrary"),
            vmem_limit_bytes=vmem_limit,
        ),
        cost_estimate=cost,
    )(x, w_kn)

    return out[:M, :n_out]


class ParallelLinear:
    """JAX/Pallas port of the PyTorch ParallelLinear module (Linear, bias=False).

    The constructor is the analogue of load_state_dict: the nn.Linear weight
    [col_size, row_size] is transposed to [K, N] and lane-padded ONCE here, so
    the per-call path streams the weight in its final layout with no extra copy.
    """

    def __init__(self, weight: jax.Array):
        n_out, k_in = weight.shape  # nn.Linear layout: [col_size, row_size]
        out_is_f32 = jnp.dtype(weight.dtype) == jnp.dtype(jnp.float32)
        tk, tn = _select_kn_tiles(k_in, n_out, jnp.dtype(weight.dtype).itemsize,
                                  out_is_f32)
        k_p = _round_up(k_in, tk)
        n_p = _round_up(n_out, tn)

        w_kn = jnp.asarray(weight).T  # [K, N]
        if (k_p, n_p) != (k_in, n_out):
            w_kn = jnp.pad(w_kn, ((0, k_p - k_in), (0, n_p - n_out)))

        self._w_kn = jax.device_put(w_kn)
        self._n_out = int(n_out)
        self._k_in = int(k_in)
        self._tk = int(tk)
        self._tn = int(tn)

    def __call__(self, x: jax.Array) -> jax.Array:
        orig_shape = x.shape
        assert orig_shape[-1] == self._k_in, "row_size mismatch"
        if x.ndim != 2:
            x = x.reshape(-1, orig_shape[-1])
        y = _parallel_linear_call(x, self._w_kn,
                                  n_out=self._n_out, tk=self._tk, tn=self._tn)
        if len(orig_shape) != 2:
            y = y.reshape(*orig_shape[:-1], self._n_out)
        return y


if __name__ == "__main__":
    # Small shapes consistent with the module: batch=8, row_size=32, col_size=64.
    batch, row_size, col_size = 8, 32, 64

    key = jax.random.PRNGKey(0)
    kx, kw, kx2, kw2 = jax.random.split(key, 4)

    x = jax.random.normal(kx, (batch, row_size), dtype=jnp.float32)
    # Deterministic stand-in for nn.Linear.weight -> shape (col_size, row_size).
    weight = jax.random.normal(kw, (col_size, row_size), dtype=jnp.float32) * 0.02

    layer = ParallelLinear(weight)          # one-time load-time weight prep
    y = layer(x)
    jax.block_until_ready(y)

    y_ref = x @ weight.T
    assert y.shape == (batch, col_size)
    assert jnp.allclose(y, y_ref, atol=1e-5, rtol=1e-5)

    # Awkward, non-lane-aligned dims to exercise the padding / slicing paths.
    x2 = jax.random.normal(kx2, (5, 200), dtype=jnp.float32)
    w2 = jax.random.normal(kw2, (300, 200), dtype=jnp.float32) * 0.02
    layer2 = ParallelLinear(w2)
    y2 = layer2(x2)
    jax.block_until_ready(y2)
    assert y2.shape == (5, 300)
    assert jnp.allclose(y2, x2 @ w2.T, atol=1e-4, rtol=1e-4)

    print("KERNEL_OK")
</pallas_src>

<mosaic_0001>
module attributes {stable_mosaic.version = 11 : i64} {
  func.func @_mm_kernel_single_k(%arg0: i32, %arg1: i32, %arg2: i32, %arg3: memref<8x128xf32, #tpu.memory_space<vmem>>, %arg4: memref<128x128xf32, #tpu.memory_space<vmem>>, %arg5: memref<8x128xf32, #tpu.memory_space<vmem>>) attributes {dimension_semantics = [#tpu.dimension_semantics<parallel>, #tpu.dimension_semantics<parallel>, #tpu.dimension_semantics<arbitrary>], iteration_bounds = array<i64: 1, 1, 1>, scalar_prefetch = 0 : i64, scratch_operands = 0 : i64, tpu.core_type = #tpu.core_type<tc>, window_params = [{transform_indices = @transform_0, window_bounds = array<i64: 8, 128>}, {transform_indices = @transform_1, window_bounds = array<i64: 128, 128>}, {transform_indices = @transform_2, window_bounds = array<i64: 8, 128>}]} {
    %c0 = arith.constant 0 : index
    %c0_0 = arith.constant 0 : index
    %0 = vector.load %arg3[%c0, %c0_0] : memref<8x128xf32, #tpu.memory_space<vmem>>, vector<8x128xf32>
    %c0_1 = arith.constant 0 : index
    %c0_2 = arith.constant 0 : index
    %1 = vector.load %arg4[%c0_1, %c0_2] : memref<128x128xf32, #tpu.memory_space<vmem>>, vector<128x128xf32>
    %cst = arith.constant dense<0.000000e+00> : vector<8x128xf32>
    %2 = tpu.matmul %0, %1, %cst {dimension_numbers = #tpu.dot_dimension_numbers<[1], [0], [0], [1], [0, 0, 1, 1], [], []>} : vector<8x128xf32>, vector<128x128xf32>, vector<8x128xf32> -> vector<8x128xf32>
    %c0_3 = arith.constant 0 : index
    %c0_4 = arith.constant 0 : index
    %3 = vector.load %arg5[%c0_3, %c0_4] : memref<8x128xf32, #tpu.memory_space<vmem>>, vector<8x128xf32>
    tpu.vector_store %arg5[%c0_3, %c0_4], %2 {strides = array<i32>} : memref<8x128xf32, #tpu.memory_space<vmem>>, vector<8x128xf32>,
    return
  }
  func.func @transform_0(%arg0: i32, %arg1: i32, %arg2: i32) -> (i32, i32) {
    %c0_i32 = arith.constant 0 : i32
    return %arg0, %arg2 : i32, i32
  }
  func.func @transform_1(%arg0: i32, %arg1: i32, %arg2: i32) -> (i32, i32) {
    %c0_i32 = arith.constant 0 : i32
    return %arg2, %arg1 : i32, i32
  }
  func.func @transform_2(%arg0: i32, %arg1: i32, %arg2: i32) -> (i32, i32) {
    %c0_i32 = arith.constant 0 : i32
    return %arg0, %arg1 : i32, i32
  }
}

</mosaic_0001>

<bundles_post_ra>
// kernel: _parallel_linear_call.1
= control target key start
LH: loop header
LB: loop body
LE: loop exit
PB: predicated region body
PF: predicated region fallthrough
CT: control target
= control target key end

     0   :  { %7 = vsyncpa [#allocation3], 0  ;;  %s167_s0 = inlined_call_operand.vmem [shape: f32[8,128], index: 0, kind: input, shape index: {}]   ;;  %s168_s1 = inlined_call_operand.hbm [shape: f32[128,128], index: 1, kind: input, shape index: {}]   ;;  %s169_s2 = inlined_call_operand.hbm [shape: f32[8,128], index: 2, kind: output, shape index: {}]  }
   0x1   :  { %8 = vsyncpa [#allocation4], 0  ;;  %s15_s11 = sshll.u32 %s168_s1, 4  ;;  %s139_s12 = smov [#allocation2]   ;;  %s16_s11 = int_to_ptr.hbm [resolvable:$true] %s15_s11 }
   0x2   :  { %s17_s13 = sshll.u32 %s139_s12, 4  ;;  %s140_s14 = smov 128   ;;  %s18_s13 = int_to_ptr.vmem [resolvable:$true] %s17_s13 }
   0x3   :  { %s141_s15 = smov 8  }
   0x4   :  { %23 = dma.hbm_to_vmem [thread:$0]  %s16_s11, 2048, %s18_s13, [#allocation3], %s140_s14, %s140_s14, %s141_s15  }
   0x5   :  { %135 = dma.done.wait [#allocation3], 2048  }
   0x6   :  { %136 = vsyncadd [#allocation3], 4294965248  ;;  %v44_v0 = vld [vmem:[#allocation2 + $0x78] sm:$0xff]  ;;  %v43_v1 = vld [vmem:[#allocation2 + $0x70] sm:$0xff]  ;;  %s142_s17 = smov [#allocation5]   ;;  %s73_s21 = sshll.u32 %s169_s2, 4  ;;  %s74_s21 = int_to_ptr.hbm [resolvable:$true] %s73_s21 }
   0x7   :  { %45 = vmatpush.msra.mxu0 %v44_v0  ;;  %v42_v2 = vld [vmem:[#allocation2 + $0x68] sm:$0xff]  ;;  %v41_v3 = vld [vmem:[#allocation2 + $0x60] sm:$0xff]  ;;  %v40_v4 = vld [vmem:[#allocation2 + $0x58] sm:$0xff]  ;;  %s71_s18 = sshll.u32 %s142_s17, 4  ;;  %s72_s18 = int_to_ptr.vmem [resolvable:$true] %s71_s18 }
   0x8   :  { %v39_v5 = vld [vmem:[#allocation2 + $0x50] sm:$0xff]  ;;  %v38_v6 = vld [vmem:[#allocation2 + $0x48] sm:$0xff]  ;;  %v37_v7 = vld [vmem:[#allocation2 + $0x40] sm:$0xff] }
   0x9   :  { %46 = vmatpush.msra.mxu0 %v43_v1  ;;  %v36_v8 = vld [vmem:[#allocation2 + $0x38] sm:$0xff]  ;;  %v35_v9 = vld [vmem:[#allocation2 + $0x30] sm:$0xff]  ;;  %v34_v10 = vld [vmem:[#allocation2 + $0x28] sm:$0xff] }
   0xa   :  { %v33_v11 = vld [vmem:[#allocation2 + $0x20] sm:$0xff]  ;;  %v32_v12 = vld [vmem:[#allocation2 + $0x18] sm:$0xff]  ;;  %v31_v13 = vld [vmem:[#allocation2 + $0x10] sm:$0xff] }
   0xb   :  { %47 = vmatpush.msra.mxu0 %v42_v2  ;;  %v30_v14 = vld [vmem:[#allocation2 + $0x8] sm:$0xff]  ;;  %v29_v15 = vld [vmem:[#allocation2] sm:$0xff] }
   0xc   :  { %v28_v16 = vld [vmem:[%s167_s0] sm:$0xff] }
   0xd   :  { %48 = vmatpush.msra.mxu0 %v41_v3 }
   0xf   :  { %49 = vmatpush.msra.mxu0 %v40_v4 }
  0x11   :  { %50 = vmatpush.msra.mxu0 %v39_v5 }
  0x13   :  { %51 = vmatpush.msra.mxu0 %v38_v6 }
  0x15   :  { %52 = vmatpush.msra.mxu0 %v37_v7 }
  0x17   :  { %53 = vmatpush.msra.mxu0 %v36_v8 }
  0x19   :  { %54 = vmatpush.msra.mxu0 %v35_v9 }
  0x1b   :  { %55 = vmatpush.msra.mxu0 %v34_v10 }
  0x1d   :  { %56 = vmatpush.msra.mxu0 %v33_v11 }
  0x1f   :  { %57 = vmatpush.msra.mxu0 %v32_v12 }
  0x21   :  { %58 = vmatpush.msra.mxu0 %v31_v13 }
  0x23   :  { %59 = vmatpush.msra.mxu0 %v30_v14 }
  0x25   :  { %60 = vmatpush.msra.mxu0 %v29_v15 }
  0x26   :  { %61 = vmatmul.f32.vlgmr.msra.gmra.mxu0 %v28_v16 }
  0xa3   :  { %v62_v17 = vpop.f32.mrf.mxu0 }
  0xa4   :  { %65 = vst [vmem:[#allocation5] sm:$0xff] %v62_v17 }
  0xa5   :  { %76 = dma.vmem_to_hbm [thread:$0]  %s72_s18, 128, %s74_s21, [#allocation4]  }
  0xa6   :  { %137 = dma.done.wait [#allocation4], 128  }
  0xa7   :  { %138 = vsyncadd [#allocation4], 4294967168 }
  0xa8   :  { %81 = vsyncpa [#allocation3], 1 }
  0xa9   :  { %82 = vsyncpa [#allocation4], 1 }

</bundles_post_ra>
